<compile_context>
chip_gen: v7x
topology: tpu7x:2x2x1
jax: 0.10.0
libtpu: 0.0.40
codegen_flags: <defaults>
</compile_context>

<pallas_src>
import jax
import jax.numpy as jnp
from jax import lax
from jax.experimental import pallas as pl
from jax.experimental.pallas import tpu as pltpu


def _round_up(x: int, m: int) -> int:
    return ((x + m - 1) // m) * m


def _cdiv(a: int, b: int) -> int:
    return -(-a // b)


def _vmem_capacity_bytes() -> int:
    """Physical VMEM per core; conservative fallback (v7x) if query fails."""
    try:
        cap = getattr(pltpu.get_tpu_info(), "vmem_capacity_bytes", None)
        if cap:
            return max(32 << 20, min(int(cap), 128 << 20))
    except Exception:
        pass
    return 64 << 20


# -----------------------------------------------------------------------------
# Kernels
# -----------------------------------------------------------------------------
def _mlm_head_kernel_single_pass(x_ref, w_ref, o_ref):
    # x: (tm, K), w: (tn, K)  ->  o = x @ w.T, one MXU pass, no accumulator.
    o_ref[...] = lax.dot_general(
        x_ref[...],
        w_ref[...],
        dimension_numbers=(((1,), (1,)), ((), ())),
        preferred_element_type=jnp.float32,
    ).astype(o_ref.dtype)


def _mlm_head_kernel_acc_out(x_ref, w_ref, o_ref):
    # 3-D grid, f32 output: accumulate straight into the resident output block
    # (it stays in VMEM across the K axis), so no scratch accumulator / cast.
    partial = lax.dot_general(
        x_ref[...],
        w_ref[...],
        dimension_numbers=(((1,), (1,)), ((), ())),
        preferred_element_type=jnp.float32,
    )

    @pl.when(pl.program_id(2) == 0)
    def _():
        o_ref[...] = partial

    @pl.when(pl.program_id(2) != 0)
    def _():
        o_ref[...] += partial


def _mlm_head_kernel_acc_scratch(x_ref, w_ref, o_ref, acc_ref):
    # 3-D grid, non-f32 output: f32 VMEM accumulator, cast on the last k step.
    @pl.when(pl.program_id(2) == 0)
    def _():
        acc_ref[...] = jnp.zeros_like(acc_ref)

    acc_ref[...] += lax.dot_general(
        x_ref[...],
        w_ref[...],
        dimension_numbers=(((1,), (1,)), ((), ())),
        preferred_element_type=jnp.float32,
    )

    @pl.when(pl.program_id(2) == pl.num_programs(2) - 1)
    def _():
        o_ref[...] = acc_ref[...].astype(o_ref.dtype)


# -----------------------------------------------------------------------------
# Wrapper
# -----------------------------------------------------------------------------
def prot_llama_mlm_head(
    sequence_output,
    decoder_weight,
    *,
    tm: int = None,
    tn: int = None,
    tk: int = None,
    force_tiled: bool = False,
    force_k_split: bool = False,
):
    """ProtLlamaMLMHead forward.

    sequence_output: (B, S, H); decoder_weight: (V, H) -> logits (B, S, V).
    """
    B, S, H = sequence_output.shape
    V, H2 = decoder_weight.shape
    assert H == H2, "hidden dims must match"

    out_dtype = sequence_output.dtype

    x = sequence_output.reshape(B * S, H)   # (M, K) -- free reshape
    w = decoder_weight                      # (N, K) -- untouched in HBM
    if x.dtype != w.dtype:
        # Weight dtype defines compute precision; casting the activation is
        # cheap relative to re-streaming the (V, H) weight in a wider dtype.
        x = x.astype(w.dtype)

    M, K = x.shape
    N = w.shape[0]
    in_bytes = x.dtype.itemsize
    out_bytes = jnp.dtype(out_dtype).itemsize

    vmem_budget = int(_vmem_capacity_bytes() * 3 // 4)

    cost = pl.CostEstimate(
        flops=2 * M * N * K,
        bytes_accessed=(M * K + N * K) * in_bytes + M * N * out_bytes,
        transcendentals=0,
    )

    # ---------------- path 1: whole problem in VMEM, no grid -----------------
    # Footprint includes the f32 matmul intermediate produced before .astype.
    single_bytes = (M * K + N * K) * in_bytes + M * N * (out_bytes + 4)
    if (not force_tiled) and single_bytes <= min(10 << 20, vmem_budget // 2):
        out = pl.pallas_call(
            _mlm_head_kernel_single_pass,
            out_shape=jax.ShapeDtypeStruct((M, N), out_dtype),
            compiler_params=pltpu.CompilerParams(
                vmem_limit_bytes=int(
                    min(max(2 * single_bytes, 16 << 20), vmem_budget)
                ),
            ),
            cost_estimate=cost,
        )(x, w)
        return out.reshape(B, S, N)

    # ---------------- tile selection ----------------------------------------
    if tm is None or tn is None or tk is None:
        if in_bytes <= 2 or vmem_budget >= (80 << 20):
            dm, dn, dk = 1024, 2048, 512   # bf16 anywhere, or f32 on v5e/v6e
        else:
            dm, dn, dk = 512, 1024, 512    # f32 on v7x (64 MiB VMEM)
        tm = dm if tm is None else tm
        tn = dn if tn is None else tn
        tk = dk if tk is None else tk

    # Clamp to problem extents with 8-sublane / 128-lane alignment (valid for
    # v5e 128x128 and v6e/v7x 256x256 MXU shapes alike; avoids 256-padding
    # waste for small protein vocabularies).
    tm = _round_up(max(8, min(tm, _round_up(M, 8))), 8)
    tn = _round_up(max(128, min(tn, _round_up(N, 128))), 128)

    # Expose >= 2 blocks on the parallel axes so both TensorCores (v7x) /
    # megacore halves get work.
    while _cdiv(M, tm) * _cdiv(N, tn) < 2 and tn > 128:
        tn //= 2

    def _tiled_vmem(tm_, tn_, tk_, with_scratch_acc):
        b = 2 * (tm_ * tk_ + tn_ * tk_) * in_bytes   # double-buffered inputs
        b += 2 * tm_ * tn_ * out_bytes               # double-buffered output
        if with_scratch_acc:
            b += tm_ * tn_ * 4
        return b

    grid_mn = (_cdiv(M, tm), _cdiv(N, tn))

    # ---------------- path 2: 2-D grid, K axis collapsed ---------------------
    if (not force_k_split) and _tiled_vmem(tm, tn, K, False) + (2 << 20) <= vmem_budget:
        out = pl.pallas_call(
            _mlm_head_kernel_single_pass,
            out_shape=jax.ShapeDtypeStruct((M, N), out_dtype),
            grid=grid_mn,
            in_specs=[
                pl.BlockSpec((tm, K), lambda i, j: (i, 0)),
                pl.BlockSpec((tn, K), lambda i, j: (j, 0)),
            ],
            out_specs=pl.BlockSpec((tm, tn), lambda i, j: (i, j)),
            compiler_params=pltpu.CompilerParams(
                dimension_semantics=("parallel", "parallel"),
                vmem_limit_bytes=int(
                    min(max(_tiled_vmem(tm, tn, K, False) + (8 << 20), 32 << 20),
                        vmem_budget)
                ),
            ),
            cost_estimate=cost,
        )(x, w)
        return out.reshape(B, S, N)

    # ---------------- path 3: 3-D grid with split K --------------------------
    # tk must be a multiple of 128; prefer one that divides K so no K padding
    # (an extra full-weight HBM pass) is needed.
    tk = _round_up(min(tk, max(128, _round_up(K, 128))), 128)
    if K % tk != 0:
        for cand in (512, 384, 256, 128):
            if cand <= tk and K % cand == 0:
                tk = cand
                break
    Kp = _round_up(K, tk)
    if Kp != K:
        # K remainder MUST be zero-padded: garbage in out-of-bounds K elements
        # corrupts every output, unlike OOB M/N which is masked on store.
        x = jnp.pad(x, ((0, 0), (0, Kp - K)))
        w = jnp.pad(w, ((0, 0), (0, Kp - K)))

    grid = grid_mn + (Kp // tk,)
    f32_out = jnp.dtype(out_dtype) == jnp.dtype(jnp.float32)
    kernel = _mlm_head_kernel_acc_out if f32_out else _mlm_head_kernel_acc_scratch
    scratch = [] if f32_out else [pltpu.VMEM((tm, tn), jnp.float32)]

    vmem_est = _tiled_vmem(tm, tn, tk, not f32_out)
    out = pl.pallas_call(
        kernel,
        out_shape=jax.ShapeDtypeStruct((M, N), out_dtype),
        grid=grid,
        in_specs=[
            pl.BlockSpec((tm, tk), lambda i, j, k: (i, k)),
            pl.BlockSpec((tn, tk), lambda i, j, k: (j, k)),
        ],
        out_specs=pl.BlockSpec((tm, tn), lambda i, j, k: (i, j)),
        scratch_shapes=scratch,
        compiler_params=pltpu.CompilerParams(
            dimension_semantics=("parallel", "parallel", "arbitrary"),
            vmem_limit_bytes=int(
                min(max(vmem_est + (8 << 20), 32 << 20), vmem_budget)
            ),
        ),
        cost_estimate=cost,
    )(x, w)
    return out.reshape(B, S, N)


# -----------------------------------------------------------------------------
# Self-test
# -----------------------------------------------------------------------------
if __name__ == "__main__":
    key = jax.random.PRNGKey(0)
    k1, k2, k3, k4 = jax.random.split(key, 4)

    # Small, module-consistent shapes -> whole-problem-in-VMEM path.
    batch, seq, hidden, vocab = 2, 8, 128, 256
    sequence_output = jax.random.normal(k1, (batch, seq, hidden), dtype=jnp.float32)
    # PyTorch nn.Linear(hidden, vocab, bias=False) stores weight as (vocab, hidden).
    decoder_weight = jax.random.normal(k2, (vocab, hidden), dtype=jnp.float32) * 0.02

    logits = prot_llama_mlm_head(sequence_output, decoder_weight)
    jax.block_until_ready(logits)
    ref = jnp.einsum("bsh,vh->bsv", sequence_output, decoder_weight)
    assert logits.shape == (batch, seq, vocab)
    assert jnp.allclose(logits, ref, atol=1e-4, rtol=1e-4)

    # Tiled 2-D path (collapsed K) with non-tile-aligned M/N: edge blocks are
    # masked on store, no wrapper-side pad/crop of M or N.
    b2, s2, h2, v2 = 2, 160, 320, 448     # M=320, K=320, N=448
    x2 = jax.random.normal(k3, (b2, s2, h2), dtype=jnp.float32)
    w2 = jax.random.normal(k4, (v2, h2), dtype=jnp.float32) * 0.02
    ref2 = jnp.einsum("bsh,vh->bsv", x2, w2)

    out2 = prot_llama_mlm_head(x2, w2, tm=256, tn=256, force_tiled=True)
    jax.block_until_ready(out2)
    assert out2.shape == (b2, s2, v2)
    assert jnp.allclose(out2, ref2, atol=1e-3, rtol=1e-3)

    # Tiled 3-D path, f32 output -> accumulate directly into the output block
    # (K=320 gets zero-padded to the 256-lane K tile inside the wrapper).
    out3 = prot_llama_mlm_head(x2, w2, tm=256, tn=256, tk=256,
                               force_tiled=True, force_k_split=True)
    jax.block_until_ready(out3)
    assert jnp.allclose(out3, ref2, atol=1e-3, rtol=1e-3)

    # Tiled 3-D path, bf16 in/out -> f32 scratch-accumulator variant.
    out4 = prot_llama_mlm_head(x2.astype(jnp.bfloat16), w2.astype(jnp.bfloat16),
                               tm=256, tn=256, tk=256,
                               force_tiled=True, force_k_split=True)
    jax.block_until_ready(out4)
    assert out4.dtype == jnp.bfloat16
    assert jnp.allclose(out4.astype(jnp.float32), ref2, atol=5e-2, rtol=5e-2)

    print("KERNEL_OK")
</pallas_src>

<mosaic_0001>
module attributes {stable_mosaic.version = 11 : i64} {
  func.func @_mlm_head_kernel_single_pass(%arg0: memref<16x128xf32, #tpu.memory_space<vmem>>, %arg1: memref<256x128xf32, #tpu.memory_space<vmem>>, %arg2: memref<16x256xf32, #tpu.memory_space<vmem>>) attributes {dimension_semantics = [], scalar_prefetch = 0 : i64, scratch_operands = 0 : i64, tpu.core_type = #tpu.core_type<tc>} {
    %c0 = arith.constant 0 : index
    %c0_0 = arith.constant 0 : index
    %0 = vector.load %arg0[%c0, %c0_0] : memref<16x128xf32, #tpu.memory_space<vmem>>, vector<16x128xf32>
    %c0_1 = arith.constant 0 : index
    %c0_2 = arith.constant 0 : index
    %1 = vector.load %arg1[%c0_1, %c0_2] : memref<256x128xf32, #tpu.memory_space<vmem>>, vector<256x128xf32>
    %cst = arith.constant dense<0.000000e+00> : vector<16x256xf32>
    %2 = tpu.matmul %0, %1, %cst {dimension_numbers = #tpu.dot_dimension_numbers<[1], [1], [0], [0], [0, 0, 1, 0], [], []>} : vector<16x128xf32>, vector<256x128xf32>, vector<16x256xf32> -> vector<16x256xf32>
    %c0_3 = arith.constant 0 : index
    %c0_4 = arith.constant 0 : index
    %3 = vector.load %arg2[%c0_3, %c0_4] : memref<16x256xf32, #tpu.memory_space<vmem>>, vector<16x256xf32>
    tpu.vector_store %arg2[%c0_3, %c0_4], %2 {strides = array<i32>} : memref<16x256xf32, #tpu.memory_space<vmem>>, vector<16x256xf32>,
    return
  }
}

</mosaic_0001>

<bundles_post_ra>
// kernel: tpu_custom_call.1
= control target key start
LH: loop header
LB: loop body
LE: loop exit
PB: predicated region body
PF: predicated region fallthrough
CT: control target
= control target key end

     0   :  { %7 = vsyncpa [#allocation3], 0  ;;  %s394_s0 = inlined_call_operand.hbm [shape: f32[16,128], index: 0, kind: input, shape index: {}]   ;;  %s395_s1 = inlined_call_operand.hbm [shape: f32[256,128], index: 1, kind: input, shape index: {}]   ;;  %s396_s2 = inlined_call_operand.hbm [shape: f32[16,256], index: 2, kind: output, shape index: {}]  }
   0x1   :  { %8 = vsyncpa [#allocation6], 0 }
   0x2   :  { %9 = vsyncpa [#allocation4], 0  ;;  %s336_s9 = smov [#allocation2]   ;;  %s264_s13 = scalar_lea.hbm %s394_s0, 256 }
   0x3   :  { %s15_s10 = sshll.u32 %s336_s9, 4  ;;  %p265_p0 = scmp.ne.s32.totalorder %s394_s0, %s264_s13  ;;  %s16_s10 = int_to_ptr.vmem [resolvable:$true] %s15_s10 }
   0x4   :  { %p268_p1 = scmp.lt.u32.totalorder %s264_s13, %s394_s0 }
   0x6   :  { %p270_p2 = pnand %p268_p1, %p265_p0 }
   0x8   :  { %273 = shalt.err (!%p270_p2)
}
   0x9   :  { %s274_s18 = scalar_lea.vmem %s16_s10, 256  ;;  %p279_p4 = scmp.lt.s32.totalorder %s16_s10, %s16_s10 }
   0xa   :  { %p275_p3 = scmp.ne.s32.totalorder %s16_s10, %s274_s18  ;;  %p280_p5 = scmp.lt.s32.totalorder %s274_s18, %s274_s18 }
   0xc   :  { %p281_p6 = por %p280_p5, %p279_p4 }
   0xe   :  { %p282_p7 = pnand %p281_p6, %p275_p3 }
  0x10   :  { %285 = shalt.err (!%p282_p7)
}
  0x11   :  { %s337_s19 = smov 128   ;;  %s338_s20 = smov 8  }
  0x12   :  { %21 = dma.hbm_to_vmem [thread:$0]  %s394_s0, 256, %s16_s10, [#allocation3], %s337_s19, %s337_s19, %s338_s20  }
  0x13   :  { %s339_s23 = smov [#allocation5]   ;;  %s286_s27 = scalar_lea.hbm %s395_s1, 4096 }
  0x14   :  { %s27_s24 = sshll.u32 %s339_s23, 4  ;;  %p287_p8 = scmp.ne.s32.totalorder %s395_s1, %s286_s27  ;;  %s28_s24 = int_to_ptr.vmem [resolvable:$true] %s27_s24 }
  0x15   :  { %p290_p9 = scmp.lt.u32.totalorder %s286_s27, %s395_s1 }
  0x17   :  { %p292_p10 = pnand %p290_p9, %p287_p8 }
  0x19   :  { %295 = shalt.err (!%p292_p10)
}
  0x1a   :  { %s296_s4 = scalar_lea.vmem %s28_s24, 4096  ;;  %p301_p12 = scmp.lt.s32.totalorder %s28_s24, %s28_s24 }
  0x1b   :  { %p297_p11 = scmp.ne.s32.totalorder %s28_s24, %s296_s4  ;;  %p302_p13 = scmp.lt.s32.totalorder %s296_s4, %s296_s4 }
  0x1d   :  { %p303_p0 = por %p302_p13, %p301_p12 }
  0x1f   :  { %p304_p1 = pnand %p303_p0, %p297_p11 }
  0x21   :  { %307 = shalt.err (!%p304_p1)
}
  0x22   :  { %33 = dma.hbm_to_vmem [thread:$0]  %s395_s1, 4096, %s28_s24, [#allocation6], %s337_s19, %s337_s19, %s338_s20  }
  0x23   :  { %330 = dma.done.wait [#allocation3], 256  }
  0x24   :  { %331 = vsyncadd [#allocation3], 4294967040 }
  0x25   :  { %332 = dma.done.wait [#allocation6], 4096  }
  0x26   :  { %333 = vsyncadd [#allocation6], 4294963200  ;;  %v58_v0 = vld [vmem:[#allocation5 + $0x80] sm:$0xff]  ;;  %v59_v1 = vld [vmem:[#allocation5 + $0x88] sm:$0xff]  ;;  %s340_s1 = smov [#allocation7]  }
  0x27   :  { %v42_v2 = vld [vmem:[#allocation5] sm:$0xff]  ;;  %v209_v3 = vpack.c.bf16 %v59_v1, %v58_v0  ;;  %v43_v4 = vld [vmem:[#allocation5 + $0x8] sm:$0xff]  ;;  %v60_v5 = vld [vmem:[#allocation5 + $0x90] sm:$0xff]  ;;  %s160_s6 = sshll.u32 %s340_s1, 4  ;;  %s161_s6 = int_to_ptr.vmem [resolvable:$true] %s160_s6 }
  0x28   :  { %v61_v6 = vld [vmem:[#allocation5 + $0x98] sm:$0xff]  ;;  %v211_v7 = vpack.c.bf16 %v43_v4, %v42_v2  ;;  %v44_v9 = vld [vmem:[#allocation5 + $0x10] sm:$0xff]  ;;  %v62_v11 = vld [vmem:[#allocation5 + $0xa0] sm:$0xff]  ;;  %s308_s7 = scalar_lea.vmem %s161_s6, 512  ;;  %p313_p3 = scmp.lt.s32.totalorder %s161_s6, %s161_s6 }
  0x29   :  { %v213_v8 = vpack.c.bf16 %v61_v6, %v60_v5  ;;  %210 = vmatprep.subr.bf16.mxu0 %v209_v3  ;;  %241 = vmatprep.subr.bf16.mxu1 %v209_v3  ;;  %v45_v10 = vld [vmem:[#allocation5 + $0x18] sm:$0xff]  ;;  %v63_v12 = vld [vmem:[#allocation5 + $0xa8] sm:$0xff]  ;;  %v40_v15 = vld [vmem:[#allocation2] sm:$0xff]  ;;  %p309_p2 = scmp.ne.s32.totalorder %s161_s6, %s308_s7  ;;  %p314_p4 = scmp.lt.s32.totalorder %s308_s7, %s308_s7 }
  0x2a   :  { %212 = vmatpush3.bf16.xpose.msra.mxu0 %v211_v7  ;;  %249 = vmatpush3.bf16.xpose.msra.mxu1 %v211_v7  ;;  %v215_v13 = vpack.c.bf16 %v45_v10, %v44_v9  ;;  %v217_v14 = vpack.c.bf16 %v63_v12, %v62_v11  ;;  %v41_v16 = vld [vmem:[#allocation2 + $0x8] sm:$0xff]  ;;  %v46_v17 = vld [vmem:[#allocation5 + $0x20] sm:$0xff]  ;;  %v47_v18 = vld [vmem:[#allocation5 + $0x28] sm:$0xff] }
  0x2b   :  { %214 = vmatprep.subr.bf16.mxu0 %v213_v8  ;;  %242 = vmatprep.subr.bf16.mxu1 %v213_v8  ;;  %v64_v19 = vld [vmem:[#allocation5 + $0xb0] sm:$0xff]  ;;  %v65_v20 = vld [vmem:[#allocation5 + $0xb8] sm:$0xff]  ;;  %v219_v21 = vpack.c.bf16 %v47_v18, %v46_v17  ;;  %v66_v25 = vld [vmem:[#allocation5 + $0xc0] sm:$0xff]  ;;  %p315_p5 = por %p314_p4, %p313_p3 }
  0x2c   :  { %205 = vmatprep.mubr.f32.mxu0 %v40_v15  ;;  %207 = vmatprep.mubr.f32.mxu1 %v41_v16  ;;  %v221_v22 = vpack.c.bf16 %v65_v20, %v64_v19  ;;  %v48_v23 = vld [vmem:[#allocation5 + $0x30] sm:$0xff]  ;;  %v49_v24 = vld [vmem:[#allocation5 + $0x38] sm:$0xff]  ;;  %v67_v26 = vld [vmem:[#allocation5 + $0xc8] sm:$0xff] }
  0x2d   :  { %v223_v27 = vpack.c.bf16 %v49_v24, %v48_v23  ;;  %v225_v28 = vpack.c.bf16 %v67_v26, %v66_v25  ;;  %v50_v29 = vld [vmem:[#allocation5 + $0x40] sm:$0xff]  ;;  %v51_v30 = vld [vmem:[#allocation5 + $0x48] sm:$0xff]  ;;  %v68_v31 = vld [vmem:[#allocation5 + $0xd0] sm:$0xff]  ;;  %p316_p6 = pnand %p315_p5, %p309_p2 }
  0x2e   :  { %v69_v32 = vld [vmem:[#allocation5 + $0xd8] sm:$0xff]  ;;  %v227_v33 = vpack.c.bf16 %v51_v30, %v50_v29  ;;  %v52_v35 = vld [vmem:[#allocation5 + $0x50] sm:$0xff]  ;;  %v70_v37 = vld [vmem:[#allocation5 + $0xe0] sm:$0xff] }
  0x2f   :  { %v229_v34 = vpack.c.bf16 %v69_v32, %v68_v31  ;;  %v53_v36 = vld [vmem:[#allocation5 + $0x58] sm:$0xff]  ;;  %v71_v38 = vld [vmem:[#allocation5 + $0xe8] sm:$0xff]  ;;  %v54_v41 = vld [vmem:[#allocation5 + $0x60] sm:$0xff] }
  0x30   :  { %v231_v39 = vpack.c.bf16 %v53_v36, %v52_v35  ;;  %v233_v40 = vpack.c.bf16 %v71_v38, %v70_v37  ;;  %v55_v42 = vld [vmem:[#allocation5 + $0x68] sm:$0xff]  ;;  %v72_v43 = vld [vmem:[#allocation5 + $0xf0] sm:$0xff]  ;;  %v73_v44 = vld [vmem:[#allocation5 + $0xf8] sm:$0xff] }
  0x31   :  { %v235_v45 = vpack.c.bf16 %v55_v42, %v54_v41  ;;  %v237_v46 = vpack.c.bf16 %v73_v44, %v72_v43  ;;  %v56_v47 = vld [vmem:[#allocation5 + $0x70] sm:$0xff]  ;;  %v57_v48 = vld [vmem:[#allocation5 + $0x78] sm:$0xff] }
  0x32   :  { %216 = vmatpush3.bf16.xpose.msra.mxu0 %v215_v13  ;;  %250 = vmatpush3.bf16.xpose.msra.mxu1 %v215_v13  ;;  %v239_v49 = vpack.c.bf16 %v57_v48, %v56_v47 }
  0x33   :  { %218 = vmatprep.subr.bf16.mxu0 %v217_v14  ;;  %243 = vmatprep.subr.bf16.mxu1 %v217_v14 }
  0x3a   :  { %220 = vmatpush3.bf16.xpose.msra.mxu0 %v219_v21  ;;  %251 = vmatpush3.bf16.xpose.msra.mxu1 %v219_v21 }
  0x3b   :  { %222 = vmatprep.subr.bf16.mxu0 %v221_v22  ;;  %244 = vmatprep.subr.bf16.mxu1 %v221_v22 }
  0x42   :  { %224 = vmatpush3.bf16.xpose.msra.mxu0 %v223_v27  ;;  %252 = vmatpush3.bf16.xpose.msra.mxu1 %v223_v27 }
  0x43   :  { %226 = vmatprep.subr.bf16.mxu0 %v225_v28  ;;  %245 = vmatprep.subr.bf16.mxu1 %v225_v28 }
  0x4a   :  { %228 = vmatpush3.bf16.xpose.msra.mxu0 %v227_v33  ;;  %253 = vmatpush3.bf16.xpose.msra.mxu1 %v227_v33 }
  0x4b   :  { %230 = vmatprep.subr.bf16.mxu0 %v229_v34  ;;  %246 = vmatprep.subr.bf16.mxu1 %v229_v34 }
  0x52   :  { %232 = vmatpush3.bf16.xpose.msra.mxu0 %v231_v39  ;;  %254 = vmatpush3.bf16.xpose.msra.mxu1 %v231_v39 }
  0x53   :  { %234 = vmatprep.subr.bf16.mxu0 %v233_v40  ;;  %247 = vmatprep.subr.bf16.mxu1 %v233_v40 }
  0x5a   :  { %236 = vmatpush3.bf16.xpose.msra.mxu0 %v235_v45  ;;  %255 = vmatpush3.bf16.xpose.msra.mxu1 %v235_v45 }
  0x5b   :  { %238 = vmatprep.subr.bf16.mxu0 %v237_v46  ;;  %248 = vmatprep.subr.bf16.mxu1 %v237_v46 }
  0x62   :  { %240 = vmatpush3.bf16.xpose.msra.mxu0 %v239_v49  ;;  %256 = vmatpush3.bf16.xpose.msra.mxu1 %v239_v49 }
  0x69   :  { %206 = vmatmul.mubr.f32.vlgmr.msra.gmra.mrb[0].mxu0 %v40_v15  ;;  %208 = vmatmul.mubr.f32.vlgmr.msra.gmra.mrb[0].mxu1 %v41_v16 }
 0x13c   :  { %v140_v50 = vpop.f32.mrb[0].mxu0  ;;  %v146_v51 = vpop.f32.mrb[0].mxu1 }
 0x13d   :  { %151 = vst [vmem:[#allocation7] sm:$0xff] %v140_v50  ;;  %153 = vst [vmem:[#allocation7 + $0x10] sm:$0xff] %v146_v51  ;;  %v142_v52 = vpop.f32.mrb[1].mxu0  ;;  %v148_v53 = vpop.f32.mrb[1].mxu1 }
 0x13e   :  { %152 = vst [vmem:[#allocation7 + $0x8] sm:$0xff] %v142_v52  ;;  %154 = vst [vmem:[#allocation7 + $0x18] sm:$0xff] %v148_v53 }
 0x13f   :  { %319 = shalt.err (!%p316_p6)
}
 0x140   :  { %s320_s10 = scalar_lea.hbm %s396_s2, 512 }
 0x141   :  { %p321_p7 = scmp.ne.s32.totalorder %s396_s2, %s320_s10  ;;  %p324_p8 = scmp.lt.u32.totalorder %s320_s10, %s396_s2 }
 0x143   :  { %p326_p9 = pnand %p324_p8, %p321_p7 }
 0x145   :  { %329 = shalt.err (!%p326_p9)
}
 0x146   :  { %s341_s15 = smov 256   ;;  %s342_s16 = smov 16  }
 0x147   :  { %166 = dma.vmem_to_hbm [thread:$0]  %s161_s6, 512, %s396_s2, [#allocation4], %s341_s15, %s341_s15, %s342_s16  }
 0x148   :  { %334 = dma.done.wait [#allocation4], 512  }
 0x149   :  { %335 = vsyncadd [#allocation4], 4294966784 }
 0x14a   :  { %170 = vsyncpa [#allocation3], 1 }
 0x14b   :  { %171 = vsyncpa [#allocation6], 1 }
 0x14c   :  { %172 = vsyncpa [#allocation4], 1 }

</bundles_post_ra>
